<compile_context>
chip_gen: v6e
topology: v6e:2x2x1
jax: 0.10.0
libtpu: 0.0.40
codegen_flags: <defaults>
</compile_context>

<pallas_src>
import jax
import jax.numpy as jnp
from jax.experimental import pallas as pl
from jax.experimental.pallas import tpu as pltpu


def attention_pooling_kernel(x_ref, w_ref, b_ref, o_ref):
    # x_ref: (Bt, S, D) block of batch rows
    # w_ref: (1, D)     attention projection weight (lane-dense row)
    # b_ref: (1, 1)     attention projection bias (scalar)
    # o_ref: (Bt, D)    pooled output block (lane-dense)
    xs = x_ref[...].astype(jnp.float32)                # (Bt, S, D)
    w = w_ref[...].astype(jnp.float32)                 # (1, D)

    # scores[b, s] = <x[b, s, :], w> + bias  -- VPU multiply + lane reduce.
    # (An MXU matmul here would have N=1: <1% of the systolic array useful.)
    scores = jnp.sum(xs * w[None, :, :], axis=-1) + b_ref[0, 0]   # (Bt, S)

    # Numerically stable per-row softmax over the sequence axis.
    m = jnp.max(scores, axis=-1, keepdims=True)        # (Bt, 1)
    e = jnp.exp(scores - m)                            # (Bt, S)
    denom = jnp.sum(e, axis=-1, keepdims=True)         # (Bt, 1)
    weights = e / denom                                # (Bt, S)  exact divide

    # Weighted sum over the sequence: VPU multiply + sublane reduce.
    pooled = jnp.sum(xs * weights[:, :, None], axis=1)  # (Bt, D)
    o_ref[...] = pooled.astype(o_ref.dtype)


def _choose_batch_tile(B, S, D, itemsize):
    """Pick batch tile Bt and padded batch Bp (multiple of Bt)."""
    # ~8 MiB of x per block: with double-buffering plus the f32 working set
    # this stays inside every generation's VMEM (incl. v7x 64 MiB physical /
    # 32 MiB default scoped).
    budget = 8 * 1024 * 1024
    per_row = max(1, S * D * itemsize)
    bt = int(min(B, max(1, budget // per_row)))
    if bt >= B:
        if B >= 16:
            # Split so a v7x chip's two TensorCores both get work, keeping the
            # batch tile sublane-aligned (multiple of 8).
            bt = pl.cdiv(pl.cdiv(B, 2), 8) * 8
        else:
            bt = B  # tiny batch: one full block (full-array block shapes)
    else:
        bt = max(8, (bt // 8) * 8)  # sublane-aligned batch tile
    bp = pl.cdiv(B, bt) * bt
    return int(bt), int(bp)


def attention_pooling(x, w, b):
    """x: (B, S, D); w: (D, 1)/(1, D)/(D,); b: (1,) scalar bias.

    Returns (B, D), matching the PyTorch AttentionPooling.forward output.
    """
    B, S, D = x.shape
    w_row = jnp.asarray(w).reshape(1, D).astype(jnp.float32)   # lane-dense weight row
    b_blk = jnp.asarray(b).reshape(1, 1).astype(jnp.float32)   # scalar bias block

    bt, bp = _choose_batch_tile(B, S, D, x.dtype.itemsize)
    if bp != B:
        # Zero-padded batch rows produce valid (garbage-free) outputs that are
        # simply sliced off below; rows never mix, so padding is safe.
        x_in = jnp.zeros((bp, S, D), x.dtype).at[:B].set(x)
    else:
        x_in = x

    out = pl.pallas_call(
        attention_pooling_kernel,
        out_shape=jax.ShapeDtypeStruct((bp, D), x.dtype),
        grid_spec=pltpu.PrefetchScalarGridSpec(
            num_scalar_prefetch=0,
            grid=(bp // bt,),
            in_specs=[
                pl.BlockSpec((bt, S, D), lambda i: (i, 0, 0)),   # batch tile of x
                pl.BlockSpec((1, D), lambda i: (0, 0)),          # full weight row
                pl.BlockSpec((1, 1), lambda i: (0, 0)),          # scalar bias
            ],
            out_specs=pl.BlockSpec((bt, D), lambda i: (i, 0)),   # lane-dense slab
        ),
        compiler_params=pltpu.CompilerParams(
            dimension_semantics=("parallel",),
            vmem_limit_bytes=48 * 1024 * 1024,
        ),
    )(x_in, w_row, b_blk)
    return out[:B] if bp != B else out


def attention_pooling_ref(x, w, b):
    # Elementwise (no matmul path) so the reference is full-f32 on any backend.
    scores = jnp.sum(x * jnp.asarray(w).reshape(1, 1, -1), axis=-1) + b[0]  # (B, S)
    weights = jax.nn.softmax(scores, axis=1)                                # (B, S)
    return jnp.sum(x * weights[..., None], axis=1)                          # (B, D)


if __name__ == "__main__":
    key = jax.random.PRNGKey(0)
    k_x, k_w, k_b = jax.random.split(key, 3)

    B, S, D = 2, 8, 32
    x = jax.random.normal(k_x, (B, S, D), dtype=jnp.float32)

    # Deterministic parameter init mimicking nn.Linear(D, 1):
    # uniform(-1/sqrt(D), 1/sqrt(D)) for weight and bias.
    bound = 1.0 / jnp.sqrt(jnp.float32(D))
    w = jax.random.uniform(k_w, (D, 1), dtype=jnp.float32, minval=-bound, maxval=bound)
    b = jax.random.uniform(k_b, (1,), dtype=jnp.float32, minval=-bound, maxval=bound)

    out = attention_pooling(x, w, b)
    out = jax.block_until_ready(out)

    ref = attention_pooling_ref(x, w, b)
    assert out.shape == (B, D)
    assert jnp.allclose(out, ref, atol=1e-5, rtol=1e-5), float(jnp.max(jnp.abs(out - ref)))

    print("KERNEL_OK")
</pallas_src>

<mosaic_0001>
module attributes {stable_mosaic.version = 11 : i64} {
  func.func @attention_pooling_kernel(%arg0: i32, %arg1: memref<2x8x32xf32, #tpu.memory_space<vmem>>, %arg2: memref<1x32xf32, #tpu.memory_space<vmem>>, %arg3: memref<1x1xf32, #tpu.memory_space<vmem>>, %arg4: memref<2x32xf32, #tpu.memory_space<vmem>>) attributes {dimension_semantics = [#tpu.dimension_semantics<parallel>], iteration_bounds = array<i64: 1>, scalar_prefetch = 0 : i64, scratch_operands = 0 : i64, tpu.core_type = #tpu.core_type<tc>, window_params = [{transform_indices = @transform_0, window_bounds = array<i64: 2, 8, 32>}, {pipeline_mode = #tpu.pipeline_mode<synchronous>, transform_indices = @transform_1, window_bounds = array<i64: 1, 32>}, {pipeline_mode = #tpu.pipeline_mode<synchronous>, transform_indices = @transform_2, window_bounds = array<i64: 1, 1>}, {transform_indices = @transform_3, window_bounds = array<i64: 2, 32>}]} {
    %c0 = arith.constant 0 : index
    %c0_0 = arith.constant 0 : index
    %c0_1 = arith.constant 0 : index
    %0 = vector.load %arg1[%c0, %c0_0, %c0_1] : memref<2x8x32xf32, #tpu.memory_space<vmem>>, vector<2x8x32xf32>
    %c0_2 = arith.constant 0 : index
    %c0_3 = arith.constant 0 : index
    %1 = vector.load %arg2[%c0_2, %c0_3] : memref<1x32xf32, #tpu.memory_space<vmem>>, vector<1x32xf32>
    %2 = vector.shape_cast %1 : vector<1x32xf32> to vector<1x1x32xf32>
    %3 = vector.broadcast %2 : vector<1x1x32xf32> to vector<2x8x32xf32>
    %4 = arith.mulf %0, %3 : vector<2x8x32xf32>
    %cst = arith.constant dense<0.000000e+00> : vector<2x8xf32>
    %5 = vector.multi_reduction <add>, %4, %cst [2] : vector<2x8x32xf32> to vector<2x8xf32>
    %c0_4 = arith.constant 0 : index
    %c0_5 = arith.constant 0 : index
    %6 = vector.load %arg3[%c0_4, %c0_5] : memref<1x1xf32, #tpu.memory_space<vmem>>, vector<1x1xf32>
    %7 = vector.extract %6[0, 0] : f32 from vector<1x1xf32>
    %8 = vector.broadcast %7 : f32 to vector<2x8xf32>
    %9 = arith.addf %5, %8 : vector<2x8xf32>
    %cst_6 = arith.constant dense<0xFF800000> : vector<2xf32>
    %10 = vector.multi_reduction <maximumf>, %9, %cst_6 [1] : vector<2x8xf32> to vector<2xf32>
    %11 = vector.shape_cast %10 : vector<2xf32> to vector<2x1xf32>
    %12 = vector.broadcast %11 : vector<2x1xf32> to vector<2x8xf32>
    %13 = arith.subf %9, %12 : vector<2x8xf32>
    %14 = math.exp %13 : vector<2x8xf32>
    %cst_7 = arith.constant dense<0.000000e+00> : vector<2xf32>
    %15 = vector.multi_reduction <add>, %14, %cst_7 [1] : vector<2x8xf32> to vector<2xf32>
    %16 = vector.shape_cast %15 : vector<2xf32> to vector<2x1xf32>
    %17 = vector.broadcast %16 : vector<2x1xf32> to vector<2x8xf32>
    %18 = arith.divf %14, %17 : vector<2x8xf32>
    %19 = vector.shape_cast %18 : vector<2x8xf32> to vector<2x8x1xf32>
    %20 = vector.broadcast %19 : vector<2x8x1xf32> to vector<2x8x32xf32>
    %21 = arith.mulf %0, %20 : vector<2x8x32xf32>
    %cst_8 = arith.constant dense<0.000000e+00> : vector<2x32xf32>
    %22 = vector.multi_reduction <add>, %21, %cst_8 [1] : vector<2x8x32xf32> to vector<2x32xf32>
    %c0_9 = arith.constant 0 : index
    %c0_10 = arith.constant 0 : index
    %23 = vector.load %arg4[%c0_9, %c0_10] : memref<2x32xf32, #tpu.memory_space<vmem>>, vector<2x32xf32>
    tpu.vector_store %arg4[%c0_9, %c0_10], %22 {strides = array<i32>} : memref<2x32xf32, #tpu.memory_space<vmem>>, vector<2x32xf32>,
    return
  }
  func.func @transform_0(%arg0: i32) -> (i32, i32, i32) {
    %c0_i32 = arith.constant 0 : i32
    %c0_i32_0 = arith.constant 0 : i32
    %c0_i32_1 = arith.constant 0 : i32
    return %arg0, %c0_i32, %c0_i32_0 : i32, i32, i32
  }
  func.func @transform_1(%arg0: i32) -> (i32, i32) {
    %c0_i32 = arith.constant 0 : i32
    %c0_i32_0 = arith.constant 0 : i32
    %c0_i32_1 = arith.constant 0 : i32
    return %c0_i32, %c0_i32_0 : i32, i32
  }
  func.func @transform_2(%arg0: i32) -> (i32, i32) {
    %c0_i32 = arith.constant 0 : i32
    %c0_i32_0 = arith.constant 0 : i32
    %c0_i32_1 = arith.constant 0 : i32
    return %c0_i32, %c0_i32_0 : i32, i32
  }
  func.func @transform_3(%arg0: i32) -> (i32, i32) {
    %c0_i32 = arith.constant 0 : i32
    %c0_i32_0 = arith.constant 0 : i32
    return %arg0, %c0_i32 : i32, i32
  }
}

</mosaic_0001>

<bundles_post_ra>
// kernel: tpu_custom_call.1
= control target key start
LH: loop header
LB: loop body
LE: loop exit
PB: predicated region body
PF: predicated region fallthrough
CT: control target
= control target key end

     0   :  { %s289_s0 = inlined_call_operand.hbm [shape: f32[2,8,32], index: 0, kind: input, shape index: {}]   ;;  %s290_s1 = inlined_call_operand.vmem [shape: f32[1,32], index: 1, kind: input, shape index: {}]   ;;  %s291_s2 = inlined_call_operand.<no memory space> [shape: f32[1,1], index: 2, kind: input, shape index: {}]   ;;  %s292_s3 = inlined_call_operand.hbm [shape: f32[2,32], index: 3, kind: output, shape index: {}]  }
   0x1   :  { %v8_v0 = vstv %s291_s2 }
   0x2   :  { %9 = vst [vmem:[#allocation2] sm:$0x1] %v8_v0 }
   0x3   :  { %10 = vsyncpa [#allocation4], 0 }
   0x4   :  { %11 = vsyncpa [#allocation5], 0  ;;  %s235_s14 = smov [#allocation3]  }
   0x5   :  { %s17_s15 = sshll.u32 %s235_s14, 4  ;;  %s18_s15 = int_to_ptr.vmem [resolvable:$true] %s17_s15 }
   0x6   :  { %s199_s16 = scalar_lea.vmem %s18_s15, 256  ;;  %p204_p1 = scmp.lt.s32.totalorder %s18_s15, %s18_s15 }
   0x7   :  { %p200_p0 = scmp.ne.s32.totalorder %s18_s15, %s199_s16  ;;  %p205_p2 = scmp.lt.s32.totalorder %s199_s16, %s199_s16 }
   0x9   :  { %p206_p3 = por %p205_p2, %p204_p1 }
   0xb   :  { %p207_p4 = pnand %p206_p3, %p200_p0 }
   0xd   :  { %210 = shalt.err (!%p207_p4)
}
   0xe   :  { %s236_s17 = smov 128   ;;  %s237_s18 = smov 8  }
   0xf   :  { %23 = dma.hbm_to_vmem [thread:$0]  %s289_s0, 256, %s18_s15, [#allocation4], %s236_s17, %s236_s17, %s237_s18  }
  0x10   :  { %231 = dma.done.wait [#allocation4], 256  }
  0x11   :  { %232 = vsyncadd [#allocation4], 4294967040  ;;  %v266_v1 = vld [vmem:[#allocation3] sm:$0xff]  ;;  %v173_v2 = vld [vmem:[%s290_s1] ss:$0 sm:$0xff]  ;;  %vm42_vm0 = vcmask 261120   ;;  %v56_v9 = vlaneseq }
  0x12   :  { %v271_v3 = vld [vmem:[#allocation3 + $0x8] sm:$0xff]  ;;  %v40_v4 = vmul.f32 %v173_v2, %v266_v1  ;;  %v49_v6 = vld [vmem:[#allocation2] sm:$0x1]  ;;  %vm66_vm1 = vcmask 1041409   ;;  %vm69_vm2 = vcmask 58368   ;;  %v238_v22 = vmov 0  }
  0x13   :  { %v41_v5 = vmul.f32 %v173_v2, %v271_v3  ;;  %174 = vpush %v49_v6  ;;  %v57_v10 = vand.u32 127, %v56_v9  ;;  %v59_v11 = vshrl.u32 %v56_v9, 7  ;;  %182 = vset.pattern.permute.xlu0 %v238_v22  ;;  %181 = vset.pattern.permute.xlu1 %v238_v22  ;;  %s239_s1 = smov [#allocation6]   ;;  %vm156_vm3 = vcmask 254976  }
  0x14   :  { %v43_v7 = vsel %vm42_vm0, %v40_v4, 0.0  ;;  %s164_s22 = sshll.u32 %s239_s1, 4  ;;  %s165_s22 = int_to_ptr.vmem [resolvable:$true] %s164_s22 }
  0x15   :  { %44 = vadd.xlane.f32.xlu0 %v43_v7  ;;  %v46_v8 = vsel %vm42_vm0, %v41_v5, 0.0  ;;  %v60_v14 = vsub.s32 %v57_v10, %v59_v11  ;;  %v76_v23 = vsub.s32 0, %v59_v11  ;;  %v80_v24 = vsub.s32 1, %v59_v11  ;;  %s211_s23 = scalar_lea.vmem %s165_s22, 32  ;;  %p216_p6 = scmp.lt.s32.totalorder %s165_s22, %s165_s22 }
  0x16   :  { %p212_p5 = scmp.ne.s32.totalorder %s165_s22, %s211_s23  ;;  %p217_p7 = scmp.lt.s32.totalorder %s211_s23, %s211_s23 }
  0x18   :  { %p218_p8 = por %p217_p7, %p216_p6 }
  0x19   :  { %47 = vadd.xlane.f32.xlu0 %v46_v8 }
  0x1a   :  { %p219_p9 = pnand %p218_p8, %p212_p5 }
  0x44   :  { %s175_s0 = spop %174 }
  0x45   :  { %v51_v12 = vstv %s175_s0 }
  0x9e   :  { %v45_v13 = vpop.xlane.xlu0 %44 }
  0x9f   :  { %v52_v15 = vadd.f32 %v51_v12, %v45_v13 }
  0xa1   :  { %v61_v18 = vrot.slane %v52_v15, %v60_v14 }
  0xa2   :  { %v48_v16 = vpop.xlane.xlu0 %47 }
  0xa3   :  { %v53_v17 = vadd.f32 %v51_v12, %v48_v16 }
  0xa5   :  { %v65_v19 = vrot.slane %v53_v17, %v60_v14 }
  0xa7   :  { %v67_v20 = vsel %vm66_vm1, %v65_v19, %v61_v18 }
  0xa8   :  { %v70_v21 = vsel %vm69_vm2, %v67_v20, -inf }
  0xa9   :  { %71 = vmax.xlane.f32.xlu1 %v70_v21 }
 0x132   :  { %v72_v25 = vpop.xlane.xlu1 %71 }
 0x133   :  { %v77_v26 = vrot.slane %v72_v25, %v76_v23  ;;  %v81_v27 = vrot.slane %v72_v25, %v80_v24 }
 0x135   :  { %v84_v28 = vsub.f32 %v52_v15, %v77_v26  ;;  %v85_v29 = vsub.f32 %v53_v17, %v81_v27 }
 0x137   :  { %v86_v30 = vmul.f32 1.442695, %v84_v28  ;;  %v88_v31 = vmul.f32 1.442695, %v85_v29 }
 0x139   :  { %183 = vpow2.f32 %v86_v30 }
 0x13a   :  { %185 = vpow2.f32 %v88_v31 }
 0x146   :  { %v184_v32 = vpop.eup %183 }
 0x147   :  { %v186_v33 = vpop.eup %185  ;;  %93 = vperm.xlu1 %181, %v184_v32  }
 0x148   :  { %96 = vperm.xlu0 %182, %v186_v33  }
 0x1c2   :  { %v94_v34 = vpop.permute.xlu1 %93 }
 0x1c3   :  { %v97_v35 = vpop.permute.xlu0 %96  ;;  %v101_v36 = vrot.slane %v94_v34, %v60_v14 }
 0x1c4   :  { %v105_v37 = vrot.slane %v97_v35, %v60_v14 }
 0x1c6   :  { %v106_v38 = vsel %vm66_vm1, %v105_v37, %v101_v36 }
 0x1c7   :  { %v108_v39 = vsel %vm69_vm2, %v106_v38, 0.0 }
 0x1c8   :  { %109 = vadd.xlane.f32.xlu1 %v108_v39 }
 0x251   :  { %v110_v40 = vpop.xlane.xlu1 %109 }
 0x252   :  { %v115_v41 = vrot.slane %v110_v40, %v76_v23  ;;  %v119_v42 = vrot.slane %v110_v40, %v80_v24 }
 0x254   :  { %187 = vrcp.f32 %v115_v41 }
 0x255   :  { %189 = vrcp.f32 %v119_v42 }
 0x261   :  { %v188_v43 = vpop.eup %187 }
 0x262   :  { %v123_v44 = vmul.f32 %v188_v43, %v184_v32  ;;  %v190_v45 = vpop.eup %189 }
 0x263   :  { %v125_v46 = vmul.f32 %v190_v45, %v186_v33 }
 0x264   :  { %128 = vperm.xlu0 %182, %v123_v44  }
 0x268   :  { %133 = vperm.xlu0 %182, %v125_v46  }
 0x2df   :  { %v129_v47 = vpop.permute.xlu0 %128 }
 0x2e0   :  { %v136_v48 = vmul.f32 %v129_v47, %v266_v1 }
 0x2e2   :  { %v138_v49 = vsel %vm42_vm0, %v136_v48, 0.0 }
 0x2e3   :  { %v139_v50 = vrot.slane %v138_v49, 4  ;;  %v134_v51 = vpop.permute.xlu0 %133 }
 0x2e4   :  { %v137_v52 = vmul.f32 %v134_v51, %v271_v3 }
 0x2e5   :  { %v140_v53 = vadd.f32 %v139_v50, %v138_v49 }
 0x2e6   :  { %v145_v54 = vsel %vm42_vm0, %v137_v52, 0.0 }
 0x2e7   :  { %v141_v55 = vrot.slane %v140_v53, 2  ;;  %v146_v56 = vrot.slane %v145_v54, 4 }
 0x2e9   :  { %v142_v57 = vadd.f32 %v141_v55, %v140_v53  ;;  %v147_v58 = vadd.f32 %v146_v56, %v145_v54 }
 0x2eb   :  { %v148_v59 = vrot.slane %v147_v58, 2  ;;  %v143_v60 = vrot.slane %v142_v57, 1 }
 0x2ed   :  { %v149_v61 = vadd.f32 %v148_v59, %v147_v58  ;;  %v144_v63 = vadd.f32 %v143_v60, %v142_v57 }
 0x2ef   :  { %v150_v62 = vrot.slane %v149_v61, 1 }
 0x2f1   :  { %v151_v0 = vadd.f32 %v150_v62, %v149_v61 }
 0x2f3   :  { %v154_v1 = vsel %vm66_vm1, %v151_v0, %v144_v63 }
 0x2f4   :  { %157 = vst.msk [vmem:[#allocation6] sm:$0x3] %vm156_vm3, %v154_v1 }
 0x2f5   :  { %222 = shalt.err (!%p219_p9)
}
 0x2f6   :  { %167 = dma.vmem_to_hbm [thread:$0]  %s165_s22, 32, %s292_s3, [#allocation5]  }
 0x2f7   :  { %233 = dma.done.wait [#allocation5], 32  }
 0x2f8   :  { %234 = vsyncadd [#allocation5], 4294967264 }
 0x2f9   :  { %171 = vsyncpa [#allocation4], 1 }
 0x2fa   :  { %172 = vsyncpa [#allocation5], 1 }

</bundles_post_ra>
